<compile_context>
chip_gen: v6e
topology: v6e:2x2x1
jax: 0.10.0
libtpu: 0.0.40
codegen_flags: <defaults>
</compile_context>

<pallas_src>
import jax
import jax.numpy as jnp
from jax.experimental import pallas as pl
from jax.experimental.pallas import tpu as pltpu

LANE = 128
SUBLANE_BF16 = 16  # bf16 packs 16 sublanes per vreg


def _round_up(x, m):
    return (x + m - 1) // m * m


def _fused_hetero_linear_kernel(tid_ref, x_ref, w_ref, o_ref):
    # tid_ref (SMEM scalar prefetch) is consumed only by the index_maps.
    # Hot path: one MXU matmul per row tile, bf16 inputs, f32 accumulation,
    # full-lane (128-wide) bf16 stores.
    o_ref[...] = jnp.dot(
        x_ref[...], w_ref[...], preferred_element_type=jnp.float32
    ).astype(o_ref.dtype)


def fused_hetero_linear(x_packed, w_slab, tile_type_ids, tm):
    """x_packed: (R, K_pad) bf16, rows of all types concatenated (R % tm == 0).
    w_slab:    (T, K_pad, OUT_pad) bf16, per-type transposed+padded weights.
    tile_type_ids: (R // tm,) int32, node-type index for each row tile.
    """
    total_rows, k_pad = x_packed.shape
    n_types, _, out_pad = w_slab.shape
    num_tiles = total_rows // tm

    # Advisory cost estimate for XLA scheduling around the custom call.
    cost = pl.CostEstimate(
        flops=2 * total_rows * k_pad * out_pad,
        transcendentals=0,
        bytes_accessed=(
            total_rows * k_pad * 2        # bf16 activations in
            + total_rows * out_pad * 2    # bf16 output
            + n_types * k_pad * out_pad * 2  # bf16 weights
        ),
    )

    # Double-buffered VMEM footprint of one grid step (x in, out, weights).
    vmem_bytes = (
        2 * (tm * k_pad * 2)          # bf16 x tiles
        + 2 * (tm * out_pad * 2)      # bf16 out tiles
        + 2 * (k_pad * out_pad * 2)   # bf16 weight blocks
    )
    compiler_kwargs = dict(
        # Row tiles are independent -> shard across the 2 TCs on v7x;
        # neutral on single-TC v5e/v6e.
        dimension_semantics=("parallel",),
    )
    # Only override the scoped VMEM default if the tile footprint demands it
    # (v5e default 16 MiB; v7x physical is 64 MiB so clamp there).
    if vmem_bytes > (12 << 20):
        compiler_kwargs["vmem_limit_bytes"] = min(2 * vmem_bytes, 64 << 20)

    return pl.pallas_call(
        _fused_hetero_linear_kernel,
        out_shape=jax.ShapeDtypeStruct((total_rows, out_pad), jnp.bfloat16),
        grid_spec=pltpu.PrefetchScalarGridSpec(
            num_scalar_prefetch=1,
            grid=(num_tiles,),
            in_specs=[
                # Row tile of packed activations.
                pl.BlockSpec((tm, k_pad), lambda i, tid: (i, 0)),
                # Weight slab selected by the row tile's node-type id
                # (data-dependent index_map via scalar prefetch).
                pl.BlockSpec((None, k_pad, out_pad),
                             lambda i, tid: (tid[i], 0, 0)),
            ],
            out_specs=pl.BlockSpec((tm, out_pad), lambda i, tid: (i, 0)),
        ),
        compiler_params=pltpu.CompilerParams(**compiler_kwargs),
        cost_estimate=cost,
    )(tile_type_ids, x_packed, w_slab)


class HeteroLinearPallas:
    """Mirror of hetero_linear: a dict of per-ntype bias-free linear layers,
    evaluated by a single fused Pallas kernel.

    Fast path (recommended for NSHE, whose node features are static across
    forwards): call pack_inputs(...) ONCE, then forward_packed(...) per step
    and unpack(...) only when the sliced per-type dict is really needed.
    __call__ remains a drop-in equivalent of hetero_linear.forward.
    """

    def __init__(self, linear_list, key, row_tile=1024, out_dtype=jnp.bfloat16):
        # linear_list: iterable of (name, in_features, out_features)
        assert row_tile % SUBLANE_BF16 == 0, "row_tile must be a multiple of 16"
        self.row_tile = int(row_tile)          # STATIC: never derived per-call
        self.out_dtype = out_dtype
        self.specs = {name: (in_f, out_f) for name, in_f, out_f in linear_list}
        self.type_index = {name: i for i, (name, _, _) in enumerate(linear_list)}
        self.k_pad = _round_up(max(in_f for _, in_f, _ in linear_list), LANE)
        self.out_pad = _round_up(max(out_f for _, _, out_f in linear_list), LANE)

        # Raw weights kept in nn.Linear convention (out_f, in_f), f32, for
        # reference checks / export.  The kernel uses the pre-transposed,
        # pre-padded bf16 slab built once here (no per-forward transpose).
        self.weights = {}
        slabs = []
        for name, in_f, out_f in linear_list:
            key, sub = jax.random.split(key)
            # nn.Linear default init: uniform(-1/sqrt(in_f), 1/sqrt(in_f)).
            bound = 1.0 / jnp.sqrt(jnp.float32(in_f))
            w = jax.random.uniform(
                sub, (out_f, in_f), dtype=jnp.float32, minval=-bound, maxval=bound
            )
            self.weights[name] = w
            wt = jnp.zeros((self.k_pad, self.out_pad), dtype=jnp.float32)
            wt = wt.at[:in_f, :out_f].set(w.T)
            slabs.append(wt.astype(jnp.bfloat16))
        self.w_slab = jnp.stack(slabs, axis=0)  # (T, K_pad, OUT_pad) bf16

    # ---- pack-once API ----------------------------------------------------
    def pack_inputs(self, h_dict):
        """Pack all per-type features into one lane-dense bf16 slab.
        Do this ONCE if features are static (they are in NSHE)."""
        tm = self.row_tile
        x_blocks, tile_ids, row_spans = [], [], []
        offset = 0
        for name, h in h_dict.items():
            n, in_f = h.shape
            out_f = self.specs[name][1]
            n_pad = _round_up(max(int(n), 1), tm)
            xb = jnp.zeros((n_pad, self.k_pad), dtype=jnp.bfloat16)
            xb = xb.at[:n, :in_f].set(h.astype(jnp.bfloat16))
            x_blocks.append(xb)
            tile_ids.extend([self.type_index[name]] * (n_pad // tm))
            row_spans.append((name, offset, int(n), out_f))
            offset += n_pad
        x_packed = jnp.concatenate(x_blocks, axis=0)
        tile_type_ids = jnp.asarray(tile_ids, dtype=jnp.int32)
        return x_packed, tile_type_ids, tuple(row_spans)

    def forward_packed(self, x_packed, tile_type_ids):
        """Run the fused kernel; returns the padded (R, OUT_pad) bf16 slab.
        Prefer consuming this slab directly downstream: slicing it back into
        per-type views costs an extra output-sized HBM pass."""
        return fused_hetero_linear(x_packed, self.w_slab, tile_type_ids,
                                   self.row_tile)

    def unpack(self, out_packed, row_spans):
        out = {}
        for name, row0, n, out_f in row_spans:
            out[name] = out_packed[row0:row0 + n, :out_f].astype(self.out_dtype)
        return out

    # ---- drop-in hetero_linear.forward ------------------------------------
    def __call__(self, h_dict):
        x_packed, tile_type_ids, row_spans = self.pack_inputs(h_dict)
        out_packed = self.forward_packed(x_packed, tile_type_ids)
        return self.unpack(out_packed, row_spans)


if __name__ == "__main__":
    key = jax.random.PRNGKey(0)

    # Heterogeneous graph with three node types, distinct input dims,
    # common output dim (as used by NSHE to project into a shared space).
    linear_list = [
        ("paper", 16, 32),
        ("author", 24, 32),
        ("subject", 8, 32),
    ]

    key, kp, ka, ks, kw = jax.random.split(key, 5)
    h_dict = {
        "paper": jax.random.normal(kp, (10, 16), dtype=jnp.float32),
        "author": jax.random.normal(ka, (6, 24), dtype=jnp.float32),
        "subject": jax.random.normal(ks, (4, 8), dtype=jnp.float32),
    }

    # row_tile default is 1024 (production NSHE graphs: 1k-2k rows/tile keeps
    # per-step overhead negligible while staying <<1% of VMEM).  The demo has
    # only ~20 total rows across 3 types, so we pick the smallest legal static
    # tile to keep per-type padding bounded (T * row_tile / 2 << total rows
    # guidance) while exercising the exact production kernel path.
    model = HeteroLinearPallas(linear_list, kw, row_tile=SUBLANE_BF16 * 8)

    # Pack once (features are static in NSHE), run the fused kernel, unpack.
    x_packed, tile_type_ids, row_spans = model.pack_inputs(h_dict)
    out_packed = model.forward_packed(x_packed, tile_type_ids)
    out_dict = model.unpack(out_packed, row_spans)
    out_dict = jax.tree_util.tree_map(jax.block_until_ready, out_dict)

    # Correctness check against plain f32 JAX reference.  Kernel uses bf16
    # activations/weights/outputs with f32 accumulation -> looser tolerance.
    for ntype, h in h_dict.items():
        ref = h @ model.weights[ntype].T
        got = out_dict[ntype].astype(jnp.float32)
        assert got.shape == ref.shape, (got.shape, ref.shape)
        assert jnp.allclose(got, ref, atol=1e-1, rtol=1e-1), (
            ntype,
            float(jnp.max(jnp.abs(got - ref))),
        )

    print("KERNEL_OK")
</pallas_src>

<mosaic_0001>
module attributes {stable_mosaic.version = 11 : i64} {
  func.func @_fused_hetero_linear_kernel(%arg0: i32, %arg1: memref<3xi32, #tpu.memory_space<smem>>, %arg2: memref<128x128xbf16, #tpu.memory_space<vmem>>, %arg3: memref<1x128x128xbf16, #tpu.memory_space<vmem>>, %arg4: memref<128x128xbf16, #tpu.memory_space<vmem>>) attributes {dimension_semantics = [#tpu.dimension_semantics<parallel>], iteration_bounds = array<i64: 3>, scalar_prefetch = 1 : i64, scratch_operands = 0 : i64, tpu.core_type = #tpu.core_type<tc>, window_params = [{transform_indices = @transform_0, window_bounds = array<i64: 128, 128>}, {transform_indices = @transform_1, window_bounds = array<i64: 1, 128, 128>}, {transform_indices = @transform_2, window_bounds = array<i64: 128, 128>}]} {
    %c0 = arith.constant 0 : index
    %c0_0 = arith.constant 0 : index
    %0 = vector.load %arg2[%c0, %c0_0] : memref<128x128xbf16, #tpu.memory_space<vmem>>, vector<128x128xbf16>
    %c0_1 = arith.constant 0 : index
    %c0_2 = arith.constant 0 : index
    %c0_3 = arith.constant 0 : index
    %1 = vector.load %arg3[%c0_1, %c0_2, %c0_3] : memref<1x128x128xbf16, #tpu.memory_space<vmem>>, vector<1x128x128xbf16>
    %2 = vector.shape_cast %1 : vector<1x128x128xbf16> to vector<128x128xbf16>
    %cst = arith.constant dense<0.000000e+00> : vector<128x128xf32>
    %3 = tpu.matmul %0, %2, %cst {dimension_numbers = #tpu.dot_dimension_numbers<[1], [0], [0], [1], [0, 0, 1, 1], [], []>} : vector<128x128xbf16>, vector<128x128xbf16>, vector<128x128xf32> -> vector<128x128xf32>
    %4 = arith.truncf %3 : vector<128x128xf32> to vector<128x128xbf16>
    %c0_4 = arith.constant 0 : index
    %c0_5 = arith.constant 0 : index
    %5 = vector.load %arg4[%c0_4, %c0_5] : memref<128x128xbf16, #tpu.memory_space<vmem>>, vector<128x128xbf16>
    tpu.vector_store %arg4[%c0_4, %c0_5], %4 {strides = array<i32>} : memref<128x128xbf16, #tpu.memory_space<vmem>>, vector<128x128xbf16>,
    return
  }
  func.func @transform_0(%arg0: i32, %arg1: memref<3xi32, #tpu.memory_space<smem>>) -> (i32, i32) {
    %c0_i32 = arith.constant 0 : i32
    %c0_i32_0 = arith.constant 0 : i32
    return %arg0, %c0_i32 : i32, i32
  }
  func.func @transform_1(%arg0: i32, %arg1: memref<3xi32, #tpu.memory_space<smem>>) -> (i32, i32, i32) {
    %0 = arith.index_cast %arg0 : i32 to index
    %1 = memref.load %arg1[%0] : memref<3xi32, #tpu.memory_space<smem>>
    %c0_i32 = arith.constant 0 : i32
    %c0_i32_0 = arith.constant 0 : i32
    %c0_i32_1 = arith.constant 0 : i32
    return %1, %c0_i32, %c0_i32_0 : i32, i32, i32
  }
  func.func @transform_2(%arg0: i32, %arg1: memref<3xi32, #tpu.memory_space<smem>>) -> (i32, i32) {
    %c0_i32 = arith.constant 0 : i32
    %c0_i32_0 = arith.constant 0 : i32
    return %arg0, %c0_i32 : i32, i32
  }
}

</mosaic_0001>

<bundles_post_ra>
// kernel: tpu_custom_call.1
= control target key start
LH: loop header
LB: loop body
LE: loop exit
PB: predicated region body
PF: predicated region fallthrough
CT: control target
= control target key end

     0   :  { %s1069_s12 = smov [#allocation3]   ;;  %s1386_s0 = inlined_call_operand.hbm [shape: s32[3], index: 0, kind: input, shape index: {}]   ;;  %s1387_s1 = inlined_call_operand.hbm [shape: bf16[384,128], index: 1, kind: input, shape index: {}]   ;;  %s1388_s2 = inlined_call_operand.hbm [shape: bf16[3,128,128], index: 2, kind: input, shape index: {}]   ;;  %s1389_s3 = inlined_call_operand.hbm [shape: bf16[384,128], index: 3, kind: output, shape index: {}]  }
   0x1   :  { %1398 = sst [smem:[#allocation16_spill]] %s1387_s1 }
   0x2   :  { %9 = dma.hbm_to_smem %s1386_s0, 16, %s1069_s12, [#allocation2] }
   0x3   :  { %1027 = dma.done.wait [#allocation2], 16 }
   0x4   :  { %1028 = vsyncadd [#allocation2], 4294967280 }
   0x5   :  { %11 = sfence }
   0x6   :  { %12 = vsyncpa [#allocation5], 0 }
   0x7   :  { %14 = vsyncpa [#allocation5 + $0x1], 0 }
   0x8   :  { %15 = vsyncpa [#allocation8], 0 }
   0x9   :  { %17 = vsyncpa [#allocation8 + $0x1], 0 }
   0xa   :  { %18 = vsyncpa [#allocation6], 0 }
   0xb   :  { %20 = vsyncpa [#allocation6 + $0x1], 0  ;;  %s1100_s15 = smov 0   ;;  %s1102_s16 = smov 0  }
   0xc   :  { %s1104_s17 = smov 0   ;;  %s1106_s18 = smov 0  }
   0xd   :  { %s1108_s19 = smov 0   ;;  %s1110_s0 = smov 0  }
   0xe   :  { %s1112_s20 = smov 0  }
   0xf LB: > { %s1136_s21 = sadd.s32 4294967295, %s1067_s20   ;;  %s629_s22 = sadd.s32 4294967294, %s1067_s20   ;;  %s1067_s20 = sphi %s1112_s20, %s1428_s20   ;;  %s1063_s0 = sphi %s1110_s0, %s1427_s0   ;;  %s1059_s19 = sphi %s1108_s19, %s1426_s19   ;;  %s1055_s18 = sphi %s1106_s18, %s1425_s18   ;;  %s1051_s17 = sphi %s1104_s17, %s1424_s17   ;;  %s1047_s16 = sphi %s1102_s16, %s1423_s16   ;;  %s1043_s15 = sphi %s1100_s15, %s1422_s15  }
  0x10   : > { %s1140_s23 = sadd.s32 1, %s1067_s20   ;;  %s33_s24 = sadd.s32 1, %s1063_s0 }
  0x11   : > { %s30_s25 = ssub.s32 %s1067_s20, %s1140_s23  ;;  %p40_p0 = scmp.ne.s32.totalorder %s1063_s0, %s1059_s19 }
  0x12   : > { %p31_p1 = scmp.eq.s32.totalorder %s30_s25, 0  ;;  %p1391_p2 = scmp.eq.s32.totalorder %s1067_s20, 0 }
  0x13   : > { %p46_p3 = scmp.ne.s32.totalorder %s1059_s19, %s1055_s18  ;;  %p1392_p4 = scmp.eq.s32.totalorder %s1136_s21, 0 }
  0x14   : > { %s1152_s26 = scalar_select %p31_p1, %s1063_s0, %s33_s24  }
  0x15   : > { %p1156_p5 = por %p1391_p2, %p40_p0  ;;  %p1162_p6 = por %p1392_p4, %p46_p3 }
  0x16   : > { %s1167_s29 = sld [smem:[#allocation3 + %s1140_s23]]  ;;  %p98_p7 = scmp.eq.s32.totalorder %s1136_s21, 2 }
  0x17   : > { %s1400_s28 = scalar_select %p1162_p6, 1, 0 }
  0x18   : > { %p104_p8 = scmp.eq.s32.totalorder %s629_s22, 2  ;;  %p1170_p9 = por %p98_p7, %p40_p0 }
  0x19   : > { %p1390_p10 = scmp.lt.s32.totalorder %s1067_s20, 3  ;;  %s124_s5 = sand.u32 1, %s1063_s0  }
  0x1a   : > { %s1401_s30 = scalar_select %p1170_p9, 1, 0 }
  0x1b   : > { %p1175_p11 = por %p104_p8, %p46_p3  ;;  %s632_s6 = sshll.u32 %s124_s5, 6 }
  0x1c   : > { %s679_s7 = sshll.u32 %s1067_s20, 10  ;;  %s1403_s1 = sld [smem:[#allocation16_spill]] }
  0x1d   : > { %s1402_s4 = scalar_select %p1175_p11, 1, 0 }
  0x1e   : > { %s128_s11 = scalar_lea.vmem [#allocation4], %s632_s6  ;;  %p1192_p12 = pnand %p1390_p10, %p1156_p5 }
  0x1f   : > { %s135_s12 = sshll.u32 %s128_s11, 4  ;;  %s1197_s14 = scalar_lea.sflag [#allocation5], %s124_s5  ;;  %s1186_s12 = int_to_ptr.vmem [resolvable:$true] %s135_s12 }
  0x20   : > { %p919_p1 = pneg %p1192_p12 }
  0x22   : > { %s1184_s10 = scalar_lea.hbm %s1403_s1, %s679_s7  ;;  %s922_s6 = scalar_lea.hbm %s1403_s1, 3072 }
  0x23   : > { %s917_s22 = scalar_lea.hbm %s1184_s10, 1024  ;;  %p923_p5 = scmp.lt.s32.totalorder %s1184_s10, %s1403_s1 }
  0x24   : > { %p918_p0 = scmp.ne.s32.totalorder %s1184_s10, %s917_s22  ;;  %p924_p8 = scmp.lt.s32.totalorder %s922_s6, %s917_s22 }
  0x26   : > { %p920_p3 = pnand %p919_p1, %p918_p0  ;;  %p925_p10 = por %p924_p8, %p923_p5 }
  0x28   : > { %p921_p7 = pneg %p920_p3 }
  0x2a   : > { %p926_p2 = pnand %p925_p10, %p921_p7 }
  0x2c   : > { %929 = shalt.err (!%p926_p2)
}
  0x2d   : > { %s930_s5 = scalar_lea.vmem %s1186_s12, 1024  ;;  %s1070_s8 = smov [#allocation4]  }
  0x2e   : > { %p931_p4 = scmp.ne.s32.totalorder %s1186_s12, %s930_s5  ;;  %s935_s9 = sshll.u32 %s1070_s8, 4  ;;  %s936_s9 = int_to_ptr.vmem [resolvable:$false] %s935_s9 }
  0x2f   : > { %s937_s11 = scalar_lea.vmem %s936_s9, 2048  ;;  %p938_p3 = scmp.lt.s32.totalorder %s1186_s12, %s936_s9 }
  0x30   : > { %p933_p13 = pnand %p931_p4, %p919_p1  ;;  %p939_p11 = scmp.lt.s32.totalorder %s937_s11, %s930_s5 }
  0x32   : > { %p934_p0 = pneg %p933_p13  ;;  %p940_p9 = por %p939_p11, %p938_p3 }
  0x34   : > { %p941_p6 = pnand %p940_p9, %p934_p0 }
  0x36   : > { %944 = shalt.err (!%p941_p6)
}
  0x37   : > { %s1395_s22 = smov 64   ;;  %s1396_s24 = smov 4  }
  0x38   : > { %820 = dma.hbm_to_vmem [thread:$0]  (!%p1192_p12), %s1184_s10, 1024, %s1186_s12, %s1197_s14, %s1395_s22, %s1395_s22, %s1396_s24  }
  0x39   : > { %p165_p2 = scmp.lt.s32.totalorder %s1067_s20, 4  ;;  %p1405_p4 = scmp.ge.s32.totalorder %s1067_s20, 1 }
  0x3a   : > { %s56_s6 = sld [smem:[#allocation3 + %s1067_s20]]  ;;  %p68_p9 = scmp.ne.s32.totalorder %s1051_s17, %s1047_s16 }
  0x3b   : > { %p1224_p6 = pnand %p1405_p4, %p165_p2  ;;  %p74_p10 = scmp.ne.s32.totalorder %s1047_s16, %s1043_s15 }
  0x3c   : > { %p1407_p11 = scmp.eq.s32.totalorder %s1136_s21, 0  ;;  %s145_s27 = sand.u32 1, %s1051_s17  }
  0x3d   : > { %s1406_s25 = scalar_select %p1224_p6, 1, 0 }
  0x3e   : > { %p1235_p13 = por %p74_p10, %p1407_p11  ;;  %p1409_p1 = scmp.eq.s32.totalorder %s1067_s20, 0 }
  0x3f   : > { %s61_s10 = sadd.s32 1, %s1051_s17  ;;  %s635_s14 = sshll.u32 %s145_s27, 6 }
  0x40   : > { %s1408_s13 = scalar_select %p1235_p13, 1, 0 }
  0x41   : > { %p70_p12 = por %p68_p9, %p1409_p1  ;;  %s58_s12 = ssub.s32 %s56_s6, %s1167_s29 }
  0x42   : > { %p59_p7 = scmp.eq.s32.totalorder %s58_s12, 0  ;;  %p1410_p5 = scmp.lt.s32.totalorder %s1067_s20, 3 }
  0x43   : > { %s810_s5 = scalar_select %p70_p12, [#allocation3], [#allocation10] }
  0x44   : > { %p1246_p8 = pnand %p1410_p5, %p70_p12  ;;  %p1412_p0 = pmov %p1410_p5 }
  0x45   : > { %s1251_s15 = scalar_select %p59_p7, %s1051_s17, %s61_s10  }
  0x46   : > { %s811_s8 = scalar_select %p70_p12, %s1067_s20, 0 }
  0x47   : > { %s1430_s5 = smov (!%p1412_p0, %s810_s5), [#allocation11]  ;;  %p1413_p3 = pmov %p1412_p0 }
  0x48   : > { %s149_s11 = scalar_lea.vmem [#allocation7], %s635_s14  ;;  %s1265_s10 = scalar_lea.sflag [#allocation8], %s145_s27 }
  0x49   : > { %s1432_s8 = smov (!%p1413_p3, %s811_s8), 0  ;;  %s157_s22 = sshll.u32 %s149_s11, 4  ;;  %s1258_s22 = int_to_ptr.vmem [resolvable:$true] %s157_s22 }
  0x4a   : > { %s150_s9 = sld [smem:[%s1430_s5 + %s1432_s8]]  ;;  %p947_p4 = pneg %p1246_p8 }
  0x4b   : > { %s950_s8 = scalar_lea.hbm %s1388_s2, 3072 }
  0x50   : > { %s680_s29 = sshll.u32 %s150_s9, 10 }
  0x51   : > { %s1263_s24 = scalar_lea.hbm %s1388_s2, %s680_s29 }
  0x52   : > { %s945_s1 = scalar_lea.hbm %s1263_s24, 1024  ;;  %p951_p11 = scmp.lt.s32.totalorder %s1263_s24, %s1388_s2 }
  0x53   : > { %p946_p2 = scmp.ne.s32.totalorder %s1263_s24, %s945_s1  ;;  %p952_p1 = scmp.lt.s32.totalorder %s950_s8, %s945_s1 }
  0x55   : > { %p948_p9 = pnand %p947_p4, %p946_p2  ;;  %p953_p12 = por %p952_p1, %p951_p11 }
  0x57   : > { %p949_p10 = pneg %p948_p9 }
  0x59   : > { %p954_p7 = pnand %p953_p12, %p949_p10 }
  0x5b   : > { %957 = shalt.err (!%p954_p7)
}
  0x5c   : > { %s958_s27 = scalar_lea.vmem %s1258_s22, 1024  ;;  %s1073_s29 = smov [#allocation7]  }
  0x5d   : > { %p959_p5 = scmp.ne.s32.totalorder %s1258_s22, %s958_s27  ;;  %s963_s6 = sshll.u32 %s1073_s29, 4  ;;  %s964_s6 = int_to_ptr.vmem [resolvable:$false] %s963_s6 }
  0x5e   : > { %s965_s12 = scalar_lea.vmem %s964_s6, 2048  ;;  %p966_p2 = scmp.lt.s32.totalorder %s1258_s22, %s964_s6 }
  0x5f   : > { %p961_p0 = pnand %p959_p5, %p947_p4  ;;  %p967_p9 = scmp.lt.s32.totalorder %s965_s12, %s958_s27 }
  0x61   : > { %p962_p3 = pneg %p961_p0  ;;  %p968_p13 = por %p967_p9, %p966_p2 }
  0x63   : > { %p969_p6 = pnand %p968_p13, %p962_p3 }
  0x65   : > { %972 = shalt.err (!%p969_p6)
}
  0x66   : > { %s1414_s1 = smov 4   ;;  %s1415_s14 = smov 64  }
  0x67   : > { %825 = dma.hbm_to_vmem [thread:$0]  (!%p1246_p8), %s1263_s24, 1024, %s1258_s22, %s1265_s10, %s1415_s14, %s1415_s14, %s1414_s1  }
  0x68   : > { %p1416_p4 = scmp.ne.s32.totalorder %s1406_s25, 0 }
  0x69   : > { %s1292_s5 = sand.u32 (!%p1416_p4), 1, %s1059_s19   ;;  %p1417_p6 = scmp.ne.s32.totalorder (!%p1416_p4), %s1400_s28, 0 }
  0x6a   : > { %169 = sbr.rel (%p1416_p4) target bundleno = 372 (0x174), region = 28  ;;  %s639_s8 = sshll.u32 (!%p1416_p4), %s1292_s5, 6 }
  0x6b   : > { %s172_s9 = scalar_lea.sflag (!%p1416_p4), [#allocation5], %s1292_s5  ;;  %s1298_s7 = scalar_lea.vmem (!%p1416_p4), [#allocation4], %s639_s8 }
  0x6f   : > { %1030 = dma.done.wait (%p1417_p6), %s172_s9, 1024  }
  0x70   : > { %1032 = vsyncadd (%p1417_p6), %s172_s9, 4294966272  ;;  %s180_s22 = sand.u32 1, %s1047_s16   ;;  %p1418_p13 = scmp.ne.s32.totalorder %s1408_s13, 0 }
  0x71   : > { %s640_s24 = sshll.u32 %s180_s22, 6  ;;  %s181_s25 = scalar_lea.sflag [#allocation8], %s180_s22 }
  0x72   : > { %s1305_s10 = scalar_lea.vmem [#allocation7], %s640_s24 }
  0x73   : > { %1034 = dma.done.wait (%p1418_p13), %s181_s25, 1024  }
  0x74   : > { %1036 = vsyncadd (%p1418_p13), %s181_s25, 4294966272  ;;  %v893_v0 = vld [vmem:[%s1305_s10 + $0x38] sm:$0xff]   ;;  %v894_v1 = vld [vmem:[%s1305_s10 + $0x30] sm:$0xff]   ;;  %s209_s28 = scalar_lea.vmem [#allocation9], %s639_s8  ;;  %s697_s11 = sshll.u32 %s1136_s21, 10 }
  0x75   : > { %761 = vmatprep.subr.bf16.mxu0 %v893_v0  ;;  %793 = vmatprep.subr.bf16.mxu1 %v893_v0  ;;  %v895_v2 = vld [vmem:[%s1305_s10 + $0x28] sm:$0xff]   ;;  %v896_v3 = vld [vmem:[%s1305_s10 + $0x20] sm:$0xff]   ;;  %v897_v6 = vld [vmem:[%s1305_s10 + $0x18] sm:$0xff]   ;;  %s533_s13 = sshll.u32 %s209_s28, 4  ;;  %s1335_s6 = scalar_lea.hbm %s1389_s3, %s697_s11  ;;  %s1330_s13 = int_to_ptr.vmem [resolvable:$true] %s533_s13 }
  0x76   : > { %762 = vmatpush3.bf16.msra.mxu0 %v893_v0  ;;  %801 = vmatpush3.bf16.msra.mxu1 %v893_v0  ;;  %v901_v4 = vld [vmem:[%s1298_s7] sm:$0xff]   ;;  %v898_v7 = vld [vmem:[%s1305_s10 + $0x10] sm:$0xff]   ;;  %v899_v8 = vld [vmem:[%s1305_s10 + $0x8] sm:$0xff]   ;;  %s520_s21 = scalar_lea.sflag [#allocation6], %s1292_s5  ;;  %s973_s12 = scalar_lea.vmem %s1330_s13, 1024 }
  0x77   : > { %763 = vmatprep.subr.bf16.mxu0 %v894_v1  ;;  %794 = vmatprep.subr.bf16.mxu1 %v894_v1  ;;  %v902_v5 = vld [vmem:[%s1298_s7 + $0x20] sm:$0xff]   ;;  %v903_v10 = vld [vmem:[%s1298_s7 + $0x8] sm:$0xff]   ;;  %v905_v12 = vld [vmem:[%s1298_s7 + $0x10] sm:$0xff]   ;;  %p974_p8 = scmp.ne.s32.totalorder %s1330_s13, %s973_s12  ;;  %p1419_p10 = scmp.ne.s32.totalorder %s1401_s30, 0 }
  0x78   : > { %777 = vmatprep.mubr.bf16.mxu0 %v901_v4  ;;  %785 = vmatprep.mubr.bf16.mxu1 %v902_v5  ;;  %v900_v9 = vld [vmem:[%s1305_s10] sm:$0xff]   ;;  %v904_v11 = vld [vmem:[%s1298_s7 + $0x28] sm:$0xff]   ;;  %v906_v13 = vld [vmem:[%s1298_s7 + $0x30] sm:$0xff]   ;;  %s1074_s1 = smov [#allocation9]  }
  0x79   : > { %v907_v14 = vld [vmem:[%s1298_s7 + $0x18] sm:$0xff]   ;;  %p975_p11 = pnand %p974_p8, %p1419_p10  ;;  %s977_s14 = sshll.u32 %s1074_s1, 4  ;;  %s978_s14 = int_to_ptr.vmem [resolvable:$false] %s977_s14 }
  0x7a   : > { %764 = vmatpush3.bf16.msra.mxu0 %v894_v1  ;;  %802 = vmatpush3.bf16.msra.mxu1 %v894_v1  ;;  %v908_v15 = vld [vmem:[%s1298_s7 + $0x38] sm:$0xff]   ;;  %s979_s8 = scalar_lea.vmem %s978_s14, 2048  ;;  %p980_p12 = scmp.lt.s32.totalorder %s1330_s13, %s978_s14 }
  0x7b   : > { %765 = vmatprep.subr.bf16.mxu0 %v895_v2  ;;  %795 = vmatprep.subr.bf16.mxu1 %v895_v2  ;;  %p976_p1 = pneg %p975_p11  ;;  %p981_p7 = scmp.lt.s32.totalorder %s979_s8, %s973_s12 }
  0x7d   : > { %p982_p5 = por %p981_p7, %p980_p12 }
  0x7e   : > { %766 = vmatpush3.bf16.msra.mxu0 %v895_v2  ;;  %803 = vmatpush3.bf16.msra.mxu1 %v895_v2 }
  0x7f   : > { %767 = vmatprep.subr.bf16.mxu0 %v896_v3  ;;  %796 = vmatprep.subr.bf16.mxu1 %v896_v3  ;;  %p983_p0 = pnand %p982_p5, %p976_p1 }
  0x82   : > { %768 = vmatpush3.bf16.msra.mxu0 %v896_v3  ;;  %804 = vmatpush3.bf16.msra.mxu1 %v896_v3 }
  0x83   : > { %769 = vmatprep.subr.bf16.mxu0 %v897_v6  ;;  %797 = vmatprep.subr.bf16.mxu1 %v897_v6 }
  0x86   : > { %770 = vmatpush3.bf16.msra.mxu0 %v897_v6  ;;  %805 = vmatpush3.bf16.msra.mxu1 %v897_v6 }
  0x87   : > { %771 = vmatprep.subr.bf16.mxu0 %v898_v7  ;;  %798 = vmatprep.subr.bf16.mxu1 %v898_v7 }
  0x8a   : > { %772 = vmatpush3.bf16.msra.mxu0 %v898_v7  ;;  %806 = vmatpush3.bf16.msra.mxu1 %v898_v7 }
  0x8b   : > { %773 = vmatprep.subr.bf16.mxu0 %v899_v8  ;;  %799 = vmatprep.subr.bf16.mxu1 %v899_v8 }
  0x8e   : > { %774 = vmatpush3.bf16.msra.mxu0 %v899_v8  ;;  %807 = vmatpush3.bf16.msra.mxu1 %v899_v8 }
  0x8f   : > { %775 = vmatprep.subr.bf16.mxu0 %v900_v9  ;;  %800 = vmatprep.subr.bf16.mxu1 %v900_v9 }
  0x92   : > { %776 = vmatpush3.bf16.msra.mxu0 %v900_v9  ;;  %808 = vmatpush3.bf16.msra.mxu1 %v900_v9 }
  0x95   : > { %778 = vmatmul.mubr.bf16.vlgmr.msra.gmra.mxu0 %v903_v10  ;;  %786 = vmatmul.mubr.bf16.vlgmr.msra.gmra.mxu1 %v904_v11 }
  0x96   : > { %781 = vmatprep.mubr.bf16.mxu0 %v905_v12  ;;  %789 = vmatprep.mubr.bf16.mxu1 %v906_v13 }
  0x9d   : > { %782 = vmatmul.mubr.bf16.gmra.mxu0 %v907_v14  ;;  %790 = vmatmul.mubr.bf16.gmra.mxu1 %v908_v15 }
 0x155   : > { %v779_v16 = vpop.f32.mrf.mxu0  ;;  %v787_v17 = vpop.f32.mrf.mxu1 }
 0x157   : > { %v376_v18 = vpop.f32.mrf.mxu0  ;;  %v408_v19 = vpop.f32.mrf.mxu1 }
 0x159   : > { %v780_v20 = vpop.f32.mrf.mxu0  ;;  %v788_v21 = vpop.f32.mrf.mxu1 }
 0x15a   : > { %v706_v22 = vpack.c.bf16 %v780_v20, %v779_v16  ;;  %v726_v23 = vpack.c.bf16 %v788_v21, %v787_v17 }
 0x15b   : > { %v379_v24 = vpop.f32.mrf.mxu0  ;;  %v411_v25 = vpop.f32.mrf.mxu1 }
 0x15c   : > { %738 = vst [vmem:[%s209_s28 + $0x8] sm:$0xff] %v706_v22   ;;  %742 = vst [vmem:[%s209_s28 + $0x28] sm:$0xff] %v726_v23   ;;  %v701_v26 = vpack.c.bf16 %v379_v24, %v376_v18  ;;  %v721_v27 = vpack.c.bf16 %v411_v25, %v408_v19 }
 0x15d   : > { %v783_v28 = vpop.f32.mrf.mxu0  ;;  %v791_v29 = vpop.f32.mrf.mxu1 }
 0x15e   : > { %702 = vst [vmem:[%s209_s28] sm:$0xff] %v701_v26   ;;  %741 = vst [vmem:[%s209_s28 + $0x20] sm:$0xff] %v721_v27  }
 0x15f   : > { %v392_v30 = vpop.f32.mrf.mxu0  ;;  %v424_v31 = vpop.f32.mrf.mxu1 }
 0x161   : > { %v784_v32 = vpop.f32.mrf.mxu0  ;;  %v792_v33 = vpop.f32.mrf.mxu1 }
 0x162   : > { %v716_v34 = vpack.c.bf16 %v784_v32, %v783_v28  ;;  %v736_v35 = vpack.c.bf16 %v792_v33, %v791_v29 }
 0x163   : > { %v395_v36 = vpop.f32.mrf.mxu0  ;;  %v427_v37 = vpop.f32.mrf.mxu1 }
 0x164   : > { %740 = vst [vmem:[%s209_s28 + $0x18] sm:$0xff] %v716_v34   ;;  %744 = vst [vmem:[%s209_s28 + $0x38] sm:$0xff] %v736_v35   ;;  %v711_v38 = vpack.c.bf16 %v395_v36, %v392_v30  ;;  %v731_v39 = vpack.c.bf16 %v427_v37, %v424_v31 }
 0x166   : > { %739 = vst [vmem:[%s209_s28 + $0x10] sm:$0xff] %v711_v38   ;;  %743 = vst [vmem:[%s209_s28 + $0x30] sm:$0xff] %v731_v39  }
 0x167   : > { %986 = shalt.err (!%p983_p0)
}
 0x168   : > { %s987_s9 = scalar_lea.hbm %s1335_s6, 1024  ;;  %s991_s24 = scalar_lea.hbm %s1389_s3, 3072 }
 0x169   : > { %p988_p3 = scmp.ne.s32.totalorder %s1335_s6, %s987_s9  ;;  %p992_p4 = scmp.lt.s32.totalorder %s1335_s6, %s1389_s3 }
 0x16a   : > { %p993_p6 = scmp.lt.s32.totalorder %s991_s24, %s987_s9 }
 0x16b   : > { %p989_p2 = pnand %p988_p3, %p1419_p10 }
 0x16c   : > { %p994_p13 = por %p993_p6, %p992_p4 }
 0x16d   : > { %p990_p9 = pneg %p989_p2 }
 0x16f   : > { %p995_p8 = pnand %p994_p13, %p990_p9 }
 0x171   : > { %998 = shalt.err (!%p995_p8)
}
 0x172   : > { %s1075_s28 = smov 64   ;;  %s1076_s11 = smov 4  }
 0x173   : > { %815 = dma.vmem_to_hbm [thread:$0]  (%p1419_p10), %s1330_s13, 1024, %s1335_s6, %s520_s21, %s1075_s28, %s1075_s28, %s1076_s11  }
 0x174 PF: > { %p831_p11 = scmp.ge.s32.totalorder %s1067_s20, 2  ;;  %s548_s27 = sand.u32 1, %s1055_s18  }
 0x175   : > { %p1420_p1 = scmp.ne.s32.totalorder %s1402_s4, 0  ;;  %s549_s29 = scalar_lea.sflag [#allocation6], %s548_s27 }
 0x177   : > { %p827_p12 = pnand %p831_p11, %p1420_p1 }
 0x179   : > { %p828_p7 = pneg %p827_p12 }
 0x17b   : > { %1038 = dma.done.wait (%p828_p7), %s549_s29, 1024  }
 0x17c   : > { %1040 = vsyncadd (%p828_p7), %s549_s29, 4294966272  ;;  %s1421_s12 = smov %s1251_s15  ;;  %p23_p10 = scmp.ge.s32.totalorder %s1140_s23, 5  }
 0x17d   : > { %s1422_s15 = smov %s1047_s16  ;;  %s1423_s16 = smov %s1051_s17 }
 0x17e   : > { %s1424_s17 = smov %s1421_s12  ;;  %s1425_s18 = smov %s1059_s19 }
 0x17f   : > { %s1426_s19 = smov %s1063_s0  ;;  %s1427_s0 = smov %s1152_s26 }
 0x180   : > { %s1428_s20 = smov %s1140_s23  ;;  %25 = sbr.rel (!%p23_p10) target bundleno = 15 (0xf), region = 86 }
 0x185   :  { %554 = vsyncpa [#allocation5], 1 }
 0x186   :  { %556 = vsyncpa [#allocation5 + $0x1], 1 }
 0x187   :  { %557 = vsyncpa [#allocation8], 1 }
 0x188   :  { %559 = vsyncpa [#allocation8 + $0x1], 1 }
 0x189   :  { %560 = vsyncpa [#allocation6], 1 }
 0x18a   :  { %562 = vsyncpa [#allocation6 + $0x1], 1 }

</bundles_post_ra>
